<compile_context>
chip_gen: v6e
topology: v6e:2x2x1
jax: 0.10.0
libtpu: 0.0.40
codegen_flags: <defaults>
</compile_context>

<pallas_src>
import functools

import jax
import jax.numpy as jnp
from jax.experimental import pallas as pl
from jax.experimental.pallas import tpu as pltpu


def _round_up(n, m):
    return ((n + m - 1) // m) * m


def _layernorm_kernel(x_ref, g_ref, b_ref, o_ref, *, eps, features):
    # x_ref: (block_rows, f_padded); normalize over the last (lane) dim.
    x = x_ref[...].astype(jnp.float32)
    f_padded = x.shape[-1]

    if f_padded != features:
        # Lane-padded input: keep pad lanes out of the statistics.
        lane = jax.lax.broadcasted_iota(jnp.int32, x.shape, dimension=1)
        valid = lane < features
        x_stat = jnp.where(valid, x, 0.0)
    else:
        valid = None
        x_stat = x

    mean = jnp.sum(x_stat, axis=-1, keepdims=True) * (1.0 / features)
    diff = x - mean
    if valid is not None:
        diff = jnp.where(valid, diff, 0.0)

    # torch.std defaults to the unbiased estimator (divide by N-1), and the
    # module adds eps to std (not to variance).
    var = jnp.sum(diff * diff, axis=-1, keepdims=True) * (1.0 / (features - 1))
    std = jnp.sqrt(var)

    # Divide -> EUP approx reciprocal + VPU multiply (frees VALU slots).
    inv = pl.reciprocal(std + eps, approx=True)     # (block_rows, 1)

    g = g_ref[...].astype(jnp.float32)              # (1, f_padded)
    b = b_ref[...].astype(jnp.float32)              # (1, f_padded)
    y = diff * (g * inv) + b
    o_ref[...] = y.astype(o_ref.dtype)


def _vmem_capacity_bytes():
    try:
        info = pltpu.get_tpu_info()
        cap = getattr(info, "vmem_capacity_bytes", None)
        if cap:
            return int(cap)
    except Exception:
        pass
    return 128 << 20  # conservative default (v5e/v6e); v7x query returns 64 MiB


def _pick_block_rows(rows, f_padded, itemsize, sub, vmem_cap):
    # Double-buffered input + output blocks should use <= ~1/4 of physical VMEM.
    budget = vmem_cap // 4
    bytes_per_row = 2 * f_padded * (itemsize + itemsize)   # 2 bufs x (in + out)
    br = budget // max(bytes_per_row, 1)
    br = max(sub, min(int(br), 1024))
    br = (br // sub) * sub
    # Don't make a single block taller than the whole (padded) problem.
    br = min(br, _round_up(rows, sub))
    # Prefer >= 2 grid steps when possible (lets the grid shard over 2 TCs on v7x).
    if rows > sub and _round_up(rows, br) // br < 2:
        br = max(sub, min(br, _round_up((rows + 1) // 2, sub)))
    return br


def layer_norm(x, a_2, b_2, eps=1e-6, block_rows=None):
    """LayerNorm matching the PyTorch module: a_2*(x-mean)/(std+eps)+b_2.

    x: (..., features);  a_2, b_2: (features,).  Uses torch.std's unbiased (N-1)
    normalization with eps added to std.
    """
    orig_shape = x.shape
    features = orig_shape[-1]
    x2 = x.reshape(-1, features)
    rows = x2.shape[0]

    itemsize = jnp.dtype(x.dtype).itemsize
    sub = 8 * max(1, 4 // itemsize)          # sublane pack: 8 f32 / 16 bf16 / 32 i8
    vmem_cap = _vmem_capacity_bytes()

    # Lane-dense feature dim: pad up to a multiple of 128 (no-op if aligned).
    f_padded = _round_up(features, 128)

    if block_rows is None:
        block_rows = _pick_block_rows(rows, f_padded, itemsize, sub, vmem_cap)
    block_rows = max(sub, (int(block_rows) // sub) * sub)

    rows_padded = _round_up(rows, block_rows)

    if rows_padded != rows or f_padded != features:
        x2 = jnp.pad(x2, ((0, rows_padded - rows), (0, f_padded - features)))

    if f_padded != features:
        g2 = jnp.pad(a_2, (0, f_padded - features))
        b2 = jnp.pad(b_2, (0, f_padded - features))
    else:
        g2, b2 = a_2, b_2
    g2 = g2.reshape(1, f_padded)
    b2 = b2.reshape(1, f_padded)

    # Scoped VMEM: double-buffered in+out blocks + params + headroom.
    block_bytes = block_rows * f_padded * itemsize
    vmem_limit = 4 * block_bytes + 4 * f_padded * 4 * 2 + (8 << 20)
    vmem_limit = max(vmem_limit, 32 << 20)
    vmem_limit = min(vmem_limit, (vmem_cap * 3) // 4)

    grid = (rows_padded // block_rows,)
    kernel = functools.partial(_layernorm_kernel, eps=eps, features=features)

    out = pl.pallas_call(
        kernel,
        out_shape=jax.ShapeDtypeStruct((rows_padded, f_padded), x.dtype),
        grid_spec=pltpu.PrefetchScalarGridSpec(
            num_scalar_prefetch=0,
            grid=grid,
            in_specs=[
                pl.BlockSpec((block_rows, f_padded), lambda i: (i, 0)),
                pl.BlockSpec((1, f_padded), lambda i: (0, 0)),
                pl.BlockSpec((1, f_padded), lambda i: (0, 0)),
            ],
            out_specs=pl.BlockSpec((block_rows, f_padded), lambda i: (i, 0)),
        ),
        compiler_params=pltpu.CompilerParams(
            dimension_semantics=("parallel",),
            vmem_limit_bytes=int(vmem_limit),
        ),
    )(x2, g2, b2)

    out = out[:rows, :features]
    return out.reshape(orig_shape)


if __name__ == "__main__":
    key = jax.random.PRNGKey(0)
    batch, seq, hidden = 2, 8, 32
    x = jax.random.normal(key, (batch, seq, hidden), dtype=jnp.float32)

    # Parameters exactly as in the module's __init__ (ones / zeros)
    a_2 = jnp.ones((hidden,), dtype=jnp.float32)
    b_2 = jnp.zeros((hidden,), dtype=jnp.float32)
    eps = 1e-6

    out = layer_norm(x, a_2, b_2, eps=eps)
    jax.block_until_ready(out)

    # Reference check in plain JAX (unbiased std, matching torch.std default)
    mean = jnp.mean(x, axis=-1, keepdims=True)
    std = jnp.std(x, axis=-1, keepdims=True, ddof=1)
    ref = a_2 * (x - mean) / (std + eps) + b_2
    assert out.shape == x.shape
    # approx reciprocal (EUP) introduces small (~1e-4-level) relative deviation
    assert jnp.allclose(out, ref, atol=5e-3, rtol=5e-3), "mismatch vs reference"

    print("KERNEL_OK")
</pallas_src>

<mosaic_0001>
module attributes {stable_mosaic.version = 11 : i64} {
  func.func @_layernorm_kernel(%arg0: i32, %arg1: memref<8x128xf32, #tpu.memory_space<vmem>>, %arg2: memref<1x128xf32, #tpu.memory_space<vmem>>, %arg3: memref<1x128xf32, #tpu.memory_space<vmem>>, %arg4: memref<8x128xf32, #tpu.memory_space<vmem>>) attributes {dimension_semantics = [#tpu.dimension_semantics<parallel>], iteration_bounds = array<i64: 2>, scalar_prefetch = 0 : i64, scratch_operands = 0 : i64, tpu.core_type = #tpu.core_type<tc>, window_params = [{transform_indices = @transform_0, window_bounds = array<i64: 8, 128>}, {pipeline_mode = #tpu.pipeline_mode<synchronous>, transform_indices = @transform_1, window_bounds = array<i64: 1, 128>}, {pipeline_mode = #tpu.pipeline_mode<synchronous>, transform_indices = @transform_2, window_bounds = array<i64: 1, 128>}, {transform_indices = @transform_3, window_bounds = array<i64: 8, 128>}]} {
    %c0 = arith.constant 0 : index
    %c0_0 = arith.constant 0 : index
    %0 = vector.load %arg1[%c0, %c0_0] : memref<8x128xf32, #tpu.memory_space<vmem>>, vector<8x128xf32>
    %1 = tpu.iota {dimensions = array<i32: 1>} : vector<8x128xi32>
    %c32_i32 = arith.constant 32 : i32
    %2 = vector.broadcast %c32_i32 : i32 to vector<8x128xi32>
    %3 = arith.cmpi slt, %1, %2 : vector<8x128xi32>
    %cst = arith.constant 0.000000e+00 : f32
    %4 = vector.broadcast %cst : f32 to vector<8x128xf32>
    %5 = arith.select %3, %0, %4 : vector<8x128xi1>, vector<8x128xf32>
    %cst_1 = arith.constant dense<0.000000e+00> : vector<8xf32>
    %6 = vector.multi_reduction <add>, %5, %cst_1 [1] : vector<8x128xf32> to vector<8xf32>
    %7 = vector.shape_cast %6 : vector<8xf32> to vector<8x1xf32>
    %cst_2 = arith.constant 3.125000e-02 : f32
    %8 = vector.broadcast %cst_2 : f32 to vector<8x1xf32>
    %9 = arith.mulf %7, %8 : vector<8x1xf32>
    %10 = vector.broadcast %9 : vector<8x1xf32> to vector<8x128xf32>
    %11 = arith.subf %0, %10 : vector<8x128xf32>
    %cst_3 = arith.constant 0.000000e+00 : f32
    %12 = vector.broadcast %cst_3 : f32 to vector<8x128xf32>
    %13 = arith.select %3, %11, %12 : vector<8x128xi1>, vector<8x128xf32>
    %14 = arith.mulf %13, %13 : vector<8x128xf32>
    %cst_4 = arith.constant dense<0.000000e+00> : vector<8xf32>
    %15 = vector.multi_reduction <add>, %14, %cst_4 [1] : vector<8x128xf32> to vector<8xf32>
    %16 = vector.shape_cast %15 : vector<8xf32> to vector<8x1xf32>
    %cst_5 = arith.constant 0.0322580636 : f32
    %17 = vector.broadcast %cst_5 : f32 to vector<8x1xf32>
    %18 = arith.mulf %16, %17 : vector<8x1xf32>
    %19 = math.sqrt %18 : vector<8x1xf32>
    %cst_6 = arith.constant 9.99999997E-7 : f32
    %20 = vector.broadcast %cst_6 : f32 to vector<8x1xf32>
    %21 = arith.addf %19, %20 : vector<8x1xf32>
    %22 = tpu.reciprocal %21 {approx = true} : vector<8x1xf32> -> vector<8x1xf32>
    %c0_7 = arith.constant 0 : index
    %c0_8 = arith.constant 0 : index
    %23 = vector.load %arg2[%c0_7, %c0_8] : memref<1x128xf32, #tpu.memory_space<vmem>>, vector<1x128xf32>
    %c0_9 = arith.constant 0 : index
    %c0_10 = arith.constant 0 : index
    %24 = vector.load %arg3[%c0_9, %c0_10] : memref<1x128xf32, #tpu.memory_space<vmem>>, vector<1x128xf32>
    %25 = vector.broadcast %23 : vector<1x128xf32> to vector<8x128xf32>
    %26 = vector.broadcast %22 : vector<8x1xf32> to vector<8x128xf32>
    %27 = arith.mulf %25, %26 : vector<8x128xf32>
    %28 = arith.mulf %13, %27 : vector<8x128xf32>
    %29 = vector.broadcast %24 : vector<1x128xf32> to vector<8x128xf32>
    %30 = arith.addf %28, %29 : vector<8x128xf32>
    %c0_11 = arith.constant 0 : index
    %c0_12 = arith.constant 0 : index
    %31 = vector.load %arg4[%c0_11, %c0_12] : memref<8x128xf32, #tpu.memory_space<vmem>>, vector<8x128xf32>
    tpu.vector_store %arg4[%c0_11, %c0_12], %30 {strides = array<i32>} : memref<8x128xf32, #tpu.memory_space<vmem>>, vector<8x128xf32>,
    return
  }
  func.func @transform_0(%arg0: i32) -> (i32, i32) {
    %c0_i32 = arith.constant 0 : i32
    %c0_i32_0 = arith.constant 0 : i32
    return %arg0, %c0_i32 : i32, i32
  }
  func.func @transform_1(%arg0: i32) -> (i32, i32) {
    %c0_i32 = arith.constant 0 : i32
    %c0_i32_0 = arith.constant 0 : i32
    %c0_i32_1 = arith.constant 0 : i32
    return %c0_i32, %c0_i32_0 : i32, i32
  }
  func.func @transform_2(%arg0: i32) -> (i32, i32) {
    %c0_i32 = arith.constant 0 : i32
    %c0_i32_0 = arith.constant 0 : i32
    %c0_i32_1 = arith.constant 0 : i32
    return %c0_i32, %c0_i32_0 : i32, i32
  }
  func.func @transform_3(%arg0: i32) -> (i32, i32) {
    %c0_i32 = arith.constant 0 : i32
    %c0_i32_0 = arith.constant 0 : i32
    return %arg0, %c0_i32 : i32, i32
  }
}

</mosaic_0001>

<bundles_post_ra>
// kernel: tpu_custom_call.1
= control target key start
LH: loop header
LB: loop body
LE: loop exit
PB: predicated region body
PF: predicated region fallthrough
CT: control target
= control target key end

     0   :  { %8 = vsyncpa [#allocation3], 0  ;;  %s642_s0 = inlined_call_operand.hbm [shape: f32[16,128], index: 0, kind: input, shape index: {}]   ;;  %s643_s1 = inlined_call_operand.vmem [shape: f32[1,128], index: 1, kind: input, shape index: {}]   ;;  %s644_s2 = inlined_call_operand.vmem [shape: f32[1,128], index: 2, kind: input, shape index: {}]   ;;  %s645_s3 = inlined_call_operand.hbm [shape: f32[16,128], index: 3, kind: output, shape index: {}]  }
   0x1   :  { %10 = vsyncpa [#allocation3 + $0x1], 0 }
   0x2   :  { %11 = vsyncpa [#allocation4], 0 }
   0x3   :  { %13 = vsyncpa [#allocation4 + $0x1], 0  ;;  %s491_s12 = smov 0   ;;  %s493_s13 = smov 0  }
   0x4   :  { %s495_s14 = smov 0   ;;  %s497_s15 = smov 0  }
   0x5 LB: > { %s512_s16 = sadd.s32 4294967295, %s467_s15   ;;  %s311_s17 = sadd.s32 4294967294, %s467_s15   ;;  %s467_s15 = sphi %s497_s15, %s662_s15   ;;  %s463_s14 = sphi %s495_s14, %s661_s14   ;;  %s459_s13 = sphi %s493_s13, %s660_s13   ;;  %s455_s12 = sphi %s491_s12, %s659_s12  }
   0x6   : > { %s516_s18 = sadd.s32 1, %s467_s15   ;;  %s26_s19 = sadd.s32 1, %s463_s14 }
   0x7   : > { %s23_s20 = ssub.s32 %s467_s15, %s516_s18  ;;  %p33_p0 = scmp.ne.s32.totalorder %s463_s14, %s459_s13 }
   0x8   : > { %p24_p1 = scmp.eq.s32.totalorder %s23_s20, 0  ;;  %p34_p2 = scmp.eq.s32.totalorder %s467_s15, 0 }
   0x9   : > { %p39_p3 = scmp.ne.s32.totalorder %s459_s13, %s455_s12  ;;  %p40_p4 = scmp.eq.s32.totalorder %s512_s16, 0 }
   0xa   : > { %s528_s21 = scalar_select %p24_p1, %s463_s14, %s26_s19  }
   0xb   : > { %p530_p5 = por %p34_p2, %p33_p0  ;;  %p534_p6 = por %p40_p4, %p39_p3 }
   0xc   : > { %p105_p7 = scmp.eq.s32.totalorder %s512_s16, 1  ;;  %p111_p8 = scmp.eq.s32.totalorder %s311_s17, 1 }
   0xd   : > { %s649_s23 = scalar_select %p534_p6, 1, 0 }
   0xe   : > { %p337_p10 = scmp.lt.s32.totalorder %s467_s15, 2  ;;  %p541_p11 = por %p105_p7, %p33_p0 }
   0xf   : > { %p545_p12 = por %p111_p8, %p39_p3  ;;  %s137_s26 = sand.u32 1, %s463_s14  }
  0x10   : > { %s650_s24 = scalar_select %p541_p11, 1, 0 }
  0x11   : > { %s651_s25 = scalar_select %p545_p12, 1, 0 }
  0x12   : > { %s315_s27 = sshll.u32 %s467_s15, 7  ;;  %s314_s28 = sshll.u32 %s137_s26, 3 }
  0x13   : > { %s554_s4 = scalar_lea.hbm %s642_s0, %s315_s27  ;;  %s141_s5 = scalar_lea.vmem [#allocation2], %s314_s28 }
  0x14   : > { %s148_s6 = sshll.u32 %s141_s5, 4  ;;  %p558_p13 = pnand %p337_p10, %p530_p5  ;;  %s562_s6 = int_to_ptr.vmem [resolvable:$true] %s148_s6 }
  0x15   : > { %s138_s8 = scalar_lea.sflag [#allocation3], %s137_s26  ;;  %s375_s9 = scalar_lea.hbm %s554_s4, 128 }
  0x16   : > { %p376_p2 = scmp.ne.s32.totalorder %s554_s4, %s375_s9  ;;  %p377_p3 = pneg %p558_p13 }
  0x17   : > { %s380_s17 = scalar_lea.hbm %s642_s0, 256  ;;  %p381_p5 = scmp.lt.s32.totalorder %s554_s4, %s642_s0 }
  0x18   : > { %p378_p4 = pnand %p377_p3, %p376_p2  ;;  %p382_p8 = scmp.lt.s32.totalorder %s380_s17, %s375_s9 }
  0x1a   : > { %p379_p7 = pneg %p378_p4  ;;  %p383_p10 = por %p382_p8, %p381_p5 }
  0x1c   : > { %p384_p9 = pnand %p383_p10, %p379_p7 }
  0x1e   : > { %387 = shalt.err (!%p384_p9)
}
  0x1f   : > { %s388_s22 = scalar_lea.vmem %s562_s6, 128  ;;  %s469_s26 = smov [#allocation2]  }
  0x20   : > { %p389_p0 = scmp.ne.s32.totalorder %s562_s6, %s388_s22  ;;  %s393_s27 = sshll.u32 %s469_s26, 4  ;;  %s394_s27 = int_to_ptr.vmem [resolvable:$false] %s393_s27 }
  0x21   : > { %s395_s28 = scalar_lea.vmem %s394_s27, 256  ;;  %p396_p4 = scmp.lt.s32.totalorder %s562_s6, %s394_s27 }
  0x22   : > { %p391_p1 = pnand %p389_p0, %p377_p3  ;;  %p397_p12 = scmp.lt.s32.totalorder %s395_s28, %s388_s22 }
  0x24   : > { %p392_p2 = pneg %p391_p1  ;;  %p398_p11 = por %p397_p12, %p396_p4 }
  0x26   : > { %p399_p6 = pnand %p398_p11, %p392_p2 }
  0x28   : > { %402 = shalt.err (!%p399_p6)
}
  0x29   : > { %332 = dma.hbm_to_vmem [thread:$0]  (!%p558_p13), %s554_s4, 128, %s562_s6, %s138_s8  }
  0x2a   : > { %p653_p9 = scmp.lt.s32.totalorder %s467_s15, 3  ;;  %p654_p7 = scmp.ge.s32.totalorder %s467_s15, 1 }
  0x2c   : > { %p154_p0 = pnand %p654_p7, %p653_p9 }
  0x2d   : > { %s589_s29 = sand.u32 (!%p154_p0), 1, %s459_s13   ;;  %p655_p6 = scmp.ne.s32.totalorder (!%p154_p0), %s649_s23, 0 }
  0x2e   : > { %157 = sbr.rel (%p154_p0) target bundleno = 396 (0x18c), region = 32  ;;  %s317_s30 = sshll.u32 (!%p154_p0), %s589_s29, 3 }
  0x2f   : > { %s160_s5 = scalar_lea.sflag (!%p154_p0), [#allocation3], %s589_s29  ;;  %s163_s7 = scalar_lea.vmem (!%p154_p0), [#allocation2], %s317_s30 }
  0x33   : > { %446 = dma.done.wait (%p655_p6), %s160_s5, 128  }
  0x34   : > { %448 = vsyncadd (%p655_p6), %s160_s5, 4294967168  ;;  %v187_v0 = vlaneseq  ;;  %v186_v2 = vld [vmem:[%s163_s7] sm:$0xff]  ;;  %s322_s9 = sshll.u32 %s512_s16, 7  ;;  %s185_s10 = scalar_lea.vmem [#allocation5], %s317_s30 }
  0x35   : > { %v319_v17 = vld [vmem:[%s643_s1] ss:$0 sm:$0xff]  ;;  %s241_s11 = sshll.u32 %s185_s10, 4  ;;  %s239_s20 = scalar_lea.hbm %s645_s3, %s322_s9  ;;  %s242_s11 = int_to_ptr.vmem [resolvable:$true] %s241_s11 }
  0x36   : > { %v188_v1 = vand.u32 127, %v187_v0  ;;  %v320_v20 = vld [vmem:[%s644_s2] ss:$0 sm:$0xff]  ;;  %s228_s22 = scalar_lea.sflag [#allocation4], %s589_s29  ;;  %s403_s26 = scalar_lea.vmem %s242_s11, 128 }
  0x37   : > { %p404_p11 = scmp.ne.s32.totalorder %s242_s11, %s403_s26  ;;  %p656_p12 = scmp.ne.s32.totalorder %s650_s24, 0 }
  0x38   : > { %vm189_vm0 = vcmp.lt.s32.totalorder %v188_v1, 32  ;;  %s470_s27 = smov [#allocation5]  }
  0x39   : > { %v190_v3 = vsel %vm189_vm0, %v186_v2, 0.0  ;;  %p405_p13 = pnand %p404_p11, %p656_p12  ;;  %s407_s28 = sshll.u32 %s470_s27, 4  ;;  %s408_s28 = int_to_ptr.vmem [resolvable:$false] %s407_s28 }
  0x3a   : > { %191 = vadd.xlane.f32.xlu0 %v190_v3  ;;  %s409_s16 = scalar_lea.vmem %s408_s28, 256  ;;  %p410_p3 = scmp.lt.s32.totalorder %s242_s11, %s408_s28 }
  0x3b   : > { %p406_p1 = pneg %p405_p13  ;;  %p411_p5 = scmp.lt.s32.totalorder %s409_s16, %s403_s26 }
  0x3d   : > { %p412_p8 = por %p411_p5, %p410_p3 }
  0x3f   : > { %p413_p10 = pnand %p412_p8, %p406_p1 }
  0xc3   : > { %v192_v4 = vpop.xlane.xlu0 %191 }
  0xc4   : > { %v193_v5 = vmul.f32 0.03125, %v192_v4 }
  0xc6   : > { %v194_v6 = vsub.f32 %v186_v2, %v193_v5 }
  0xc8   : > { %v195_v7 = vsel %vm189_vm0, %v194_v6, 0.0 }
  0xc9   : > { %v196_v8 = vmul.f32 %v195_v7, %v195_v7 }
  0xcb   : > { %197 = vadd.xlane.f32.xlu0 %v196_v8 }
 0x154   : > { %v198_v9 = vpop.xlane.xlu0 %197 }
 0x155   : > { %v199_v10 = vmul.f32 0.032258064, %v198_v9 }
 0x157   : > { %371 = vrsqrt.f32 %v199_v10  ;;  %vm202_vm1 = vcmp.eq.f32.partialorder %v199_v10, inf  ;;  %v205_v13 = vand.u32 2147483648, %v199_v10  ;;  %vm204_vm2 = vcmp.eq.f32.partialorder %v199_v10, 0.0 }
 0x164   : > { %v372_v11 = vpop.eup %371 }
 0x165   : > { %v201_v12 = vmul.f32 %v372_v11, %v199_v10 }
 0x167   : > { %v203_v14 = vsel %vm202_vm1, %v199_v10, %v201_v12 }
 0x168   : > { %v206_v15 = vsel %vm204_vm2, %v205_v13, %v203_v14 }
 0x169   : > { %v207_v16 = vadd.f32 1e-06, %v206_v15 }
 0x16b   : > { %373 = vrcp.f32 %v207_v16 }
 0x178   : > { %v374_v18 = vpop.eup %373 }
 0x179   : > { %v217_v19 = vmul.f32 %v374_v18, %v319_v17 }
 0x17b   : > { %v218_v21 = vmul.f32 %v217_v19, %v195_v7 }
 0x17d   : > { %v225_v22 = vadd.f32 %v320_v20, %v218_v21 }
 0x17f   : > { %226 = vst [vmem:[%s185_s10] sm:$0xff] %v225_v22 }
 0x180   : > { %416 = shalt.err (!%p413_p10)
}
 0x181   : > { %s417_s30 = scalar_lea.hbm %s239_s20, 128  ;;  %s421_s7 = scalar_lea.hbm %s645_s3, 256 }
 0x182   : > { %p418_p2 = scmp.ne.s32.totalorder %s239_s20, %s417_s30  ;;  %p422_p7 = scmp.lt.s32.totalorder %s239_s20, %s645_s3 }
 0x183   : > { %p423_p0 = scmp.lt.s32.totalorder %s421_s7, %s417_s30 }
 0x184   : > { %p419_p4 = pnand %p418_p2, %p656_p12 }
 0x185   : > { %p424_p6 = por %p423_p0, %p422_p7 }
 0x186   : > { %p420_p9 = pneg %p419_p4 }
 0x188   : > { %p425_p11 = pnand %p424_p6, %p420_p9 }
 0x18a   : > { %428 = shalt.err (!%p425_p11)
}
 0x18b   : > { %327 = dma.vmem_to_hbm [thread:$0]  (%p656_p12), %s242_s11, 128, %s239_s20, %s228_s22  }
 0x18c PF: > { %s253_s6 = sand.u32 1, %s455_s12   ;;  %p657_p13 = scmp.ne.s32.totalorder %s651_s25, 0 }
 0x18d   : > { %p658_p1 = scmp.ge.s32.totalorder %s467_s15, 2  ;;  %s254_s8 = scalar_lea.sflag [#allocation4], %s253_s6 }
 0x18f   : > { %p334_p3 = pnand %p658_p1, %p657_p13 }
 0x191   : > { %p335_p5 = pneg %p334_p3 }
 0x193   : > { %450 = dma.done.wait (%p335_p5), %s254_s8, 128  }
 0x194   : > { %452 = vsyncadd (%p335_p5), %s254_s8, 4294967168  ;;  %p16_p8 = scmp.ge.s32.totalorder %s516_s18, 4   ;;  %s659_s12 = smov %s459_s13 }
 0x195   : > { %s660_s13 = smov %s463_s14  ;;  %s661_s14 = smov %s528_s21 }
 0x196   : > { %s662_s15 = smov %s516_s18  ;;  %18 = sbr.rel (!%p16_p8) target bundleno = 5 (0x5), region = 77 }
 0x19b   :  { %259 = vsyncpa [#allocation3], 1 }
 0x19c   :  { %261 = vsyncpa [#allocation3 + $0x1], 1 }
 0x19d   :  { %262 = vsyncpa [#allocation4], 1 }
 0x19e   :  { %264 = vsyncpa [#allocation4 + $0x1], 1 }

</bundles_post_ra>
